<compile_context>
chip_gen: v7x
topology: tpu7x:2x2x1
jax: 0.10.0
libtpu: 0.0.40
codegen_flags: <defaults>
</compile_context>

<pallas_src>
import functools

import jax
import jax.numpy as jnp
from jax.experimental import pallas as pl
from jax.experimental.pallas import tpu as pltpu

LANES = 128
SUBLANES = 8
# Leading grid axis size: lets the two v7x TensorCores each stream half of the
# slab (megacore "parallel" split).  On v5e/v6e (1 TC) the chunks run
# sequentially at negligible extra cost (one extra init + epilogue).
NUM_CHUNKS = 2


def _round_up(x, m):
    return ((x + m - 1) // m) * m


def _combined_loss_kernel(x_ref, t_ref, o_ref, acc_ref, *,
                          n_rows, tile_rows, tiles_per_chunk, full_tiles,
                          emit_masked_path, pos_weight, assume_binary_targets):
    """Grid = (chunk, tile).  Each chunk streams its row tiles sequentially.

    acc_ref (VMEM f32[4, 8, 128]) per-chunk vector accumulators:
      [0] sum of w * (-bce)   (negated once at the very end)
      [1] sum of predictions
      [2] sum of targets
      [3] sum of pred * target (intersection)

    o_ref (SMEM f32[1, 4]): per-chunk scalar partial sums, written once in the
    chunk epilogue; the final BCE/Dice scalar math happens in JAX.
    """
    c = pl.program_id(0)
    i = pl.program_id(1)

    @pl.when(i == 0)
    def _():
        acc_ref[...] = jnp.zeros_like(acc_ref)

    p = x_ref[...].astype(jnp.float32)
    t = t_ref[...].astype(jnp.float32)

    fold = tile_rows // SUBLANES

    def _fold(v):
        # (tile_rows, 128) -> (8, 128) with VPU adds only; the reshape stays on
        # native (8, 128) tile boundaries so it is layout-free.
        return jnp.sum(v.reshape(fold, SUBLANES, LANES), axis=0)

    def _accumulate(p, t):
        w = 1.0 + t * (pos_weight - 1.0)          # == t*pos_weight + (1 - t)
        if assume_binary_targets:
            # Binary-target fast path: one EUP log instead of two.
            sel = jnp.where(t > 0.5, p, 1.0 - p)
            neg_bce = jnp.maximum(jnp.log(sel), -100.0)
        else:
            # PyTorch F.binary_cross_entropy clamps the log terms at -100
            # *before* the multiply; keeping that order makes masked elements
            # (p=0, t=0) contribute exactly zero to every accumulated sum.
            log_p = jnp.maximum(jnp.log(p), -100.0)
            log_1mp = jnp.maximum(jnp.log(1.0 - p), -100.0)
            neg_bce = log_1mp + t * (log_p - log_1mp)
        acc_ref[0] += _fold(w * neg_bce)
        acc_ref[1] += _fold(p)
        acc_ref[2] += _fold(t)
        acc_ref[3] += _fold(p * t)

    if emit_masked_path:
        g = c * tiles_per_chunk + i               # global (unclamped) tile idx

        @pl.when(g < full_tiles)
        def _():
            _accumulate(p, t)                     # fully-valid tile: no mask

        @pl.when(g >= full_tiles)
        def _():
            # Ragged last tile of the stream (and any phantom tile created by
            # grid rounding): zero out rows past the end of the slab.
            limit = n_rows - g * tile_rows        # <= 0 for phantom tiles
            row_ids = jax.lax.broadcasted_iota(
                jnp.int32, (tile_rows, LANES), 0)
            valid = row_ids < limit
            _accumulate(jnp.where(valid, p, 0.0), jnp.where(valid, t, 0.0))
    else:
        _accumulate(p, t)

    @pl.when(i == tiles_per_chunk - 1)
    def _():
        o_ref[0, 0] = jnp.sum(acc_ref[0])         # sum of w * (-bce)
        o_ref[0, 1] = jnp.sum(acc_ref[1])         # sum p
        o_ref[0, 2] = jnp.sum(acc_ref[2])         # sum t
        o_ref[0, 3] = jnp.sum(acc_ref[3])         # sum p*t


def combined_segmentation_loss(inputs, targets, *,
                               bce_weight=0.5, dice_weight=0.5,
                               pos_weight=5.0, smooth=1.0,
                               tile_rows=2048, buffer_count=2,
                               assume_binary_targets=False):
    """Pallas port of CombinedSegmentationLoss.forward.

    inputs, targets: same shape, probabilities in [0, 1] (any float dtype).
    assume_binary_targets: enable the single-log fast path (only valid when
        every target is exactly 0 or 1; default False keeps soft-label exact).
    Returns a scalar float32 loss.
    """
    assert inputs.shape == targets.shape
    n_elems = int(inputs.size)

    # Keep native dtype (bf16 passes straight to the DMA; the kernel widens).
    x = jnp.ravel(inputs)
    t = jnp.ravel(targets)

    # Lane alignment only (128 elements).  Typical NCHW segmentation shapes
    # (H*W a multiple of 128) never hit this branch.
    # TODO(synk): a fully pad-free path for non-128-multiple sizes needs 1-D
    # flat blocks + flat-index tail masking; kept the 2-D (rows,128) slab for
    # layout safety.
    if n_elems % LANES != 0:
        pad = LANES - n_elems % LANES
        x = jnp.pad(x, (0, pad))
        t = jnp.pad(t, (0, pad))

    rows = x.shape[0] // LANES                    # need NOT be a multiple of 8
    x2 = x.reshape(rows, LANES)
    t2 = t.reshape(rows, LANES)

    tr = min(_round_up(tile_rows, SUBLANES), _round_up(rows, SUBLANES))
    tiles_total = pl.cdiv(rows, tr)
    n_chunks = min(NUM_CHUNKS, tiles_total)
    tiles_per_chunk = pl.cdiv(tiles_total, n_chunks)
    grid_tiles = n_chunks * tiles_per_chunk       # may exceed tiles_total by 1
    full_tiles = rows // tr                       # tiles with no ragged rows
    emit_masked_path = full_tiles != grid_tiles
    last_block = tiles_total - 1

    def in_index_map(c, i):
        g = c * tiles_per_chunk + i
        # Phantom tiles created by grid rounding re-read the last valid block;
        # their contribution is fully masked inside the kernel.
        return (jnp.minimum(g, last_block), 0)

    kernel = functools.partial(
        _combined_loss_kernel,
        n_rows=rows,
        tile_rows=tr,
        tiles_per_chunk=tiles_per_chunk,
        full_tiles=full_tiles,
        emit_masked_path=emit_masked_path,
        pos_weight=float(pos_weight),
        assume_binary_targets=assume_binary_targets,
    )

    # Optional deeper prefetch if a trace ever shows exposed DMA at tile
    # boundaries (default 2 = standard double buffering).
    spec_kwargs = {}
    if buffer_count != 2:
        spec_kwargs = dict(pipeline_mode=pl.Buffered(buffer_count))

    partials = pl.pallas_call(
        kernel,
        out_shape=jax.ShapeDtypeStruct((n_chunks, 4), jnp.float32),
        grid_spec=pltpu.PrefetchScalarGridSpec(
            num_scalar_prefetch=0,
            grid=(n_chunks, tiles_per_chunk),
            in_specs=[
                pl.BlockSpec((tr, LANES), in_index_map, **spec_kwargs),
                pl.BlockSpec((tr, LANES), in_index_map, **spec_kwargs),
            ],
            out_specs=pl.BlockSpec(
                (1, 4), lambda c, i: (c, 0), memory_space=pltpu.SMEM),
            scratch_shapes=[pltpu.VMEM((4, SUBLANES, LANES), jnp.float32)],
        ),
        # Chunk axis parallel (splits across the 2 v7x TensorCores), tile axis
        # is the sequential accumulation stream.
        compiler_params=pltpu.CompilerParams(
            dimension_semantics=("parallel", "arbitrary"),
            vmem_limit_bytes=32 * 1024 * 1024),
    )(x2, t2)

    # Tiny final combine in JAX (per perf review): sum per-chunk partials,
    # negate the BCE sum once, and form the Dice term.
    sums = jnp.sum(partials, axis=0)              # (4,)
    bce_mean = -sums[0] / n_elems
    dice = (2.0 * sums[3] + smooth) / (sums[1] + sums[2] + smooth)
    return bce_weight * bce_mean + dice_weight * (1.0 - dice)


def _reference_loss(inputs, targets, *, bce_weight=0.5, dice_weight=0.5,
                    pos_weight=5.0, smooth=1.0):
    """Pure-JAX reference (mirrors the PyTorch module)."""
    p = inputs.astype(jnp.float32)
    t = targets.astype(jnp.float32)
    log_p = jnp.maximum(jnp.log(p), -100.0)
    log_1mp = jnp.maximum(jnp.log(1.0 - p), -100.0)
    bce = -(t * log_p + (1.0 - t) * log_1mp)
    w = t * pos_weight + (1.0 - t)
    bce_mean = jnp.mean(w * bce)
    pf = p.reshape(-1)
    tf = t.reshape(-1)
    inter = jnp.sum(pf * tf)
    union = jnp.sum(pf) + jnp.sum(tf)
    dice = (2.0 * inter + smooth) / (union + smooth)
    return bce_weight * bce_mean + dice_weight * (1.0 - dice)


def _make_case(key, shape, soft_targets=False):
    k1, k2 = jax.random.split(key)
    logits = jax.random.normal(k1, shape, dtype=jnp.float32)
    probs = jax.nn.sigmoid(logits)                               # (0, 1)
    if soft_targets:
        tgts = jax.random.uniform(k2, shape, dtype=jnp.float32)  # soft labels
    else:
        tgts = (jax.random.uniform(k2, shape) > 0.7).astype(jnp.float32)
    return probs, tgts


if __name__ == "__main__":
    key = jax.random.PRNGKey(0)
    k_main, k_b, k_c, k_d = jax.random.split(key, 4)

    # Main case: NCHW probabilities + binary targets (B=2, C=4, H=W=16).
    inputs, targets = _make_case(k_main, (2, 4, 16, 16))
    loss = jax.block_until_ready(combined_segmentation_loss(inputs, targets))
    ref = _reference_loss(inputs, targets)
    assert jnp.allclose(loss, ref, rtol=1e-5, atol=1e-5), (loss, ref)

    # Two-chunk + ragged-last-tile + phantom-tile path (40 rows, 16-row tiles).
    xb, tb = _make_case(k_b, (2, 5, 16, 32))
    lb = jax.block_until_ready(
        combined_segmentation_loss(xb, tb, tile_rows=16))
    rb = _reference_loss(xb, tb)
    assert jnp.allclose(lb, rb, rtol=1e-5, atol=1e-5), (lb, rb)

    # Non-lane-aligned element count (exercises the small 128-lane pad).
    xc, tc = _make_case(k_c, (3, 5, 7, 11))
    lc = jax.block_until_ready(combined_segmentation_loss(xc, tc))
    rc = _reference_loss(xc, tc)
    assert jnp.allclose(lc, rc, rtol=1e-5, atol=1e-5), (lc, rc)

    # Soft (non-binary) targets keep the exact two-log path.
    xd, td = _make_case(k_d, (1, 3, 16, 16), soft_targets=True)
    ld = jax.block_until_ready(combined_segmentation_loss(xd, td))
    rd = _reference_loss(xd, td)
    assert jnp.allclose(ld, rd, rtol=1e-5, atol=1e-5), (ld, rd)

    # Binary-target single-log fast path.
    lbin = jax.block_until_ready(
        combined_segmentation_loss(inputs, targets,
                                   assume_binary_targets=True))
    assert jnp.allclose(lbin, ref, rtol=1e-5, atol=1e-5), (lbin, ref)

    # bf16 passthrough (no wrapper upcast; kernel widens per tile).
    xh = inputs.astype(jnp.bfloat16)
    th = targets.astype(jnp.bfloat16)
    lh = jax.block_until_ready(combined_segmentation_loss(xh, th))
    rh = _reference_loss(xh, th)
    assert jnp.allclose(lh, rh, rtol=1e-5, atol=1e-5), (lh, rh)

    print("KERNEL_OK")
</pallas_src>

<mosaic_0001>
module attributes {stable_mosaic.version = 11 : i64} {
  func.func @_combined_loss_kernel(%arg0: i32, %arg1: i32, %arg2: memref<16x128xf32, #tpu.memory_space<vmem>>, %arg3: memref<16x128xf32, #tpu.memory_space<vmem>>, %arg4: memref<1x4xf32, #tpu.memory_space<smem>>, %arg5: memref<4x8x128xf32, #tpu.memory_space<vmem>>) attributes {dimension_semantics = [#tpu.dimension_semantics<parallel>, #tpu.dimension_semantics<arbitrary>], iteration_bounds = array<i64: 1, 1>, scalar_prefetch = 0 : i64, scratch_operands = 1 : i64, tpu.core_type = #tpu.core_type<tc>, window_params = [{transform_indices = @transform_0, window_bounds = array<i64: 16, 128>}, {transform_indices = @transform_1, window_bounds = array<i64: 16, 128>}, {transform_indices = @transform_2, window_bounds = array<i64: 1, 4>}]} {
    %c0_i32 = arith.constant 0 : i32
    %0 = arith.cmpi eq, %arg1, %c0_i32 : i32
    %1 = arith.extui %0 : i1 to i32
    %c0_i32_0 = arith.constant 0 : i32
    %2 = arith.cmpi ne, %1, %c0_i32_0 : i32
    scf.if %2 {
      %cst_35 = arith.constant 0.000000e+00 : f32
      %57 = vector.broadcast %cst_35 : f32 to vector<4x8x128xf32>
      %c0_36 = arith.constant 0 : index
      %c0_37 = arith.constant 0 : index
      %c0_38 = arith.constant 0 : index
      %58 = vector.load %arg5[%c0_36, %c0_37, %c0_38] : memref<4x8x128xf32, #tpu.memory_space<vmem>>, vector<4x8x128xf32>
      tpu.vector_store %arg5[%c0_36, %c0_37, %c0_38], %57 {strides = array<i32>} : memref<4x8x128xf32, #tpu.memory_space<vmem>>, vector<4x8x128xf32>,
    } else {
    }
    %c0 = arith.constant 0 : index
    %c0_1 = arith.constant 0 : index
    %3 = vector.load %arg2[%c0, %c0_1] : memref<16x128xf32, #tpu.memory_space<vmem>>, vector<16x128xf32>
    %c0_2 = arith.constant 0 : index
    %c0_3 = arith.constant 0 : index
    %4 = vector.load %arg3[%c0_2, %c0_3] : memref<16x128xf32, #tpu.memory_space<vmem>>, vector<16x128xf32>
    %cst = arith.constant 4.000000e+00 : f32
    %5 = vector.broadcast %cst : f32 to vector<16x128xf32>
    %6 = arith.mulf %4, %5 : vector<16x128xf32>
    %cst_4 = arith.constant 1.000000e+00 : f32
    %7 = vector.broadcast %cst_4 : f32 to vector<16x128xf32>
    %8 = arith.addf %7, %6 : vector<16x128xf32>
    %9 = math.log %3 : vector<16x128xf32>
    %cst_5 = arith.constant -1.000000e+02 : f32
    %10 = vector.broadcast %cst_5 : f32 to vector<16x128xf32>
    %11 = arith.maximumf %9, %10 : vector<16x128xf32>
    %cst_6 = arith.constant 1.000000e+00 : f32
    %12 = vector.broadcast %cst_6 : f32 to vector<16x128xf32>
    %13 = arith.subf %12, %3 : vector<16x128xf32>
    %14 = math.log %13 : vector<16x128xf32>
    %cst_7 = arith.constant -1.000000e+02 : f32
    %15 = vector.broadcast %cst_7 : f32 to vector<16x128xf32>
    %16 = arith.maximumf %14, %15 : vector<16x128xf32>
    %17 = arith.subf %11, %16 : vector<16x128xf32>
    %18 = arith.mulf %4, %17 : vector<16x128xf32>
    %19 = arith.addf %16, %18 : vector<16x128xf32>
    %c0_8 = arith.constant 0 : index
    %c0_9 = arith.constant 0 : index
    %c0_10 = arith.constant 0 : index
    %20 = vector.load %arg5[%c0_8, %c0_9, %c0_10] : memref<4x8x128xf32, #tpu.memory_space<vmem>>, vector<1x8x128xf32>
    %21 = vector.shape_cast %20 : vector<1x8x128xf32> to vector<8x128xf32>
    %22 = arith.mulf %8, %19 : vector<16x128xf32>
    %23 = vector.shape_cast %22 : vector<16x128xf32> to vector<2x8x128xf32>
    %cst_11 = arith.constant dense<0.000000e+00> : vector<8x128xf32>
    %24 = vector.multi_reduction <add>, %23, %cst_11 [0] : vector<2x8x128xf32> to vector<8x128xf32>
    %25 = arith.addf %21, %24 : vector<8x128xf32>
    %c0_12 = arith.constant 0 : index
    %c0_13 = arith.constant 0 : index
    %c0_14 = arith.constant 0 : index
    %26 = vector.load %arg5[%c0_12, %c0_13, %c0_14] : memref<4x8x128xf32, #tpu.memory_space<vmem>>, vector<1x8x128xf32>
    %27 = vector.shape_cast %26 : vector<1x8x128xf32> to vector<8x128xf32>
    %28 = vector.shape_cast %25 : vector<8x128xf32> to vector<1x8x128xf32>
    tpu.vector_store %arg5[%c0_12, %c0_13, %c0_14], %28 {strides = array<i32>} : memref<4x8x128xf32, #tpu.memory_space<vmem>>, vector<1x8x128xf32>,
    %c1 = arith.constant 1 : index
    %c0_15 = arith.constant 0 : index
    %c0_16 = arith.constant 0 : index
    %29 = vector.load %arg5[%c1, %c0_15, %c0_16] : memref<4x8x128xf32, #tpu.memory_space<vmem>>, vector<1x8x128xf32>
    %30 = vector.shape_cast %29 : vector<1x8x128xf32> to vector<8x128xf32>
    %31 = vector.shape_cast %3 : vector<16x128xf32> to vector<2x8x128xf32>
    %cst_17 = arith.constant dense<0.000000e+00> : vector<8x128xf32>
    %32 = vector.multi_reduction <add>, %31, %cst_17 [0] : vector<2x8x128xf32> to vector<8x128xf32>
    %33 = arith.addf %30, %32 : vector<8x128xf32>
    %c1_18 = arith.constant 1 : index
    %c0_19 = arith.constant 0 : index
    %c0_20 = arith.constant 0 : index
    %34 = vector.load %arg5[%c1_18, %c0_19, %c0_20] : memref<4x8x128xf32, #tpu.memory_space<vmem>>, vector<1x8x128xf32>
    %35 = vector.shape_cast %34 : vector<1x8x128xf32> to vector<8x128xf32>
    %36 = vector.shape_cast %33 : vector<8x128xf32> to vector<1x8x128xf32>
    tpu.vector_store %arg5[%c1_18, %c0_19, %c0_20], %36 {strides = array<i32>} : memref<4x8x128xf32, #tpu.memory_space<vmem>>, vector<1x8x128xf32>,
    %c2 = arith.constant 2 : index
    %c0_21 = arith.constant 0 : index
    %c0_22 = arith.constant 0 : index
    %37 = vector.load %arg5[%c2, %c0_21, %c0_22] : memref<4x8x128xf32, #tpu.memory_space<vmem>>, vector<1x8x128xf32>
    %38 = vector.shape_cast %37 : vector<1x8x128xf32> to vector<8x128xf32>
    %39 = vector.shape_cast %4 : vector<16x128xf32> to vector<2x8x128xf32>
    %cst_23 = arith.constant dense<0.000000e+00> : vector<8x128xf32>
    %40 = vector.multi_reduction <add>, %39, %cst_23 [0] : vector<2x8x128xf32> to vector<8x128xf32>
    %41 = arith.addf %38, %40 : vector<8x128xf32>
    %c2_24 = arith.constant 2 : index
    %c0_25 = arith.constant 0 : index
    %c0_26 = arith.constant 0 : index
    %42 = vector.load %arg5[%c2_24, %c0_25, %c0_26] : memref<4x8x128xf32, #tpu.memory_space<vmem>>, vector<1x8x128xf32>
    %43 = vector.shape_cast %42 : vector<1x8x128xf32> to vector<8x128xf32>
    %44 = vector.shape_cast %41 : vector<8x128xf32> to vector<1x8x128xf32>
    tpu.vector_store %arg5[%c2_24, %c0_25, %c0_26], %44 {strides = array<i32>} : memref<4x8x128xf32, #tpu.memory_space<vmem>>, vector<1x8x128xf32>,
    %c3 = arith.constant 3 : index
    %c0_27 = arith.constant 0 : index
    %c0_28 = arith.constant 0 : index
    %45 = vector.load %arg5[%c3, %c0_27, %c0_28] : memref<4x8x128xf32, #tpu.memory_space<vmem>>, vector<1x8x128xf32>
    %46 = vector.shape_cast %45 : vector<1x8x128xf32> to vector<8x128xf32>
    %47 = arith.mulf %3, %4 : vector<16x128xf32>
    %48 = vector.shape_cast %47 : vector<16x128xf32> to vector<2x8x128xf32>
    %cst_29 = arith.constant dense<0.000000e+00> : vector<8x128xf32>
    %49 = vector.multi_reduction <add>, %48, %cst_29 [0] : vector<2x8x128xf32> to vector<8x128xf32>
    %50 = arith.addf %46, %49 : vector<8x128xf32>
    %c3_30 = arith.constant 3 : index
    %c0_31 = arith.constant 0 : index
    %c0_32 = arith.constant 0 : index
    %51 = vector.load %arg5[%c3_30, %c0_31, %c0_32] : memref<4x8x128xf32, #tpu.memory_space<vmem>>, vector<1x8x128xf32>
    %52 = vector.shape_cast %51 : vector<1x8x128xf32> to vector<8x128xf32>
    %53 = vector.shape_cast %50 : vector<8x128xf32> to vector<1x8x128xf32>
    tpu.vector_store %arg5[%c3_30, %c0_31, %c0_32], %53 {strides = array<i32>} : memref<4x8x128xf32, #tpu.memory_space<vmem>>, vector<1x8x128xf32>,
    %c0_i32_33 = arith.constant 0 : i32
    %54 = arith.cmpi eq, %arg1, %c0_i32_33 : i32
    %55 = arith.extui %54 : i1 to i32
    %c0_i32_34 = arith.constant 0 : i32
    %56 = arith.cmpi ne, %55, %c0_i32_34 : i32
    scf.if %56 {
      %c0_35 = arith.constant 0 : index
      %c0_36 = arith.constant 0 : index
      %c0_37 = arith.constant 0 : index
      %57 = vector.load %arg5[%c0_35, %c0_36, %c0_37] : memref<4x8x128xf32, #tpu.memory_space<vmem>>, vector<1x8x128xf32>
      %58 = vector.shape_cast %57 : vector<1x8x128xf32> to vector<8x128xf32>
      %59 = vector.shape_cast %58 : vector<8x128xf32> to vector<1x8x128xf32>
      %cst_38 = arith.constant dense<0.000000e+00> : vector<1xf32>
      %60 = vector.multi_reduction <add>, %59, %cst_38 [1, 2] : vector<1x8x128xf32> to vector<1xf32>
      %61 = vector.shape_cast %60 : vector<1xf32> to vector<1x1x1xf32>
      %62 = vector.extract %61[0, 0, 0] : f32 from vector<1x1x1xf32>
      %c0_39 = arith.constant 0 : index
      %c0_40 = arith.constant 0 : index
      %63 = memref.load %arg4[%c0_39, %c0_40] : memref<1x4xf32, #tpu.memory_space<smem>>
      memref.store %62, %arg4[%c0_39, %c0_40] : memref<1x4xf32, #tpu.memory_space<smem>>
      %c1_41 = arith.constant 1 : index
      %c0_42 = arith.constant 0 : index
      %c0_43 = arith.constant 0 : index
      %64 = vector.load %arg5[%c1_41, %c0_42, %c0_43] : memref<4x8x128xf32, #tpu.memory_space<vmem>>, vector<1x8x128xf32>
      %65 = vector.shape_cast %64 : vector<1x8x128xf32> to vector<8x128xf32>
      %66 = vector.shape_cast %65 : vector<8x128xf32> to vector<1x8x128xf32>
      %cst_44 = arith.constant dense<0.000000e+00> : vector<1xf32>
      %67 = vector.multi_reduction <add>, %66, %cst_44 [1, 2] : vector<1x8x128xf32> to vector<1xf32>
      %68 = vector.shape_cast %67 : vector<1xf32> to vector<1x1x1xf32>
      %69 = vector.extract %68[0, 0, 0] : f32 from vector<1x1x1xf32>
      %c0_45 = arith.constant 0 : index
      %c1_46 = arith.constant 1 : index
      %70 = memref.load %arg4[%c0_45, %c1_46] : memref<1x4xf32, #tpu.memory_space<smem>>
      memref.store %69, %arg4[%c0_45, %c1_46] : memref<1x4xf32, #tpu.memory_space<smem>>
      %c2_47 = arith.constant 2 : index
      %c0_48 = arith.constant 0 : index
      %c0_49 = arith.constant 0 : index
      %71 = vector.load %arg5[%c2_47, %c0_48, %c0_49] : memref<4x8x128xf32, #tpu.memory_space<vmem>>, vector<1x8x128xf32>
      %72 = vector.shape_cast %71 : vector<1x8x128xf32> to vector<8x128xf32>
      %73 = vector.shape_cast %72 : vector<8x128xf32> to vector<1x8x128xf32>
      %cst_50 = arith.constant dense<0.000000e+00> : vector<1xf32>
      %74 = vector.multi_reduction <add>, %73, %cst_50 [1, 2] : vector<1x8x128xf32> to vector<1xf32>
      %75 = vector.shape_cast %74 : vector<1xf32> to vector<1x1x1xf32>
      %76 = vector.extract %75[0, 0, 0] : f32 from vector<1x1x1xf32>
      %c0_51 = arith.constant 0 : index
      %c2_52 = arith.constant 2 : index
      %77 = memref.load %arg4[%c0_51, %c2_52] : memref<1x4xf32, #tpu.memory_space<smem>>
      memref.store %76, %arg4[%c0_51, %c2_52] : memref<1x4xf32, #tpu.memory_space<smem>>
      %c3_53 = arith.constant 3 : index
      %c0_54 = arith.constant 0 : index
      %c0_55 = arith.constant 0 : index
      %78 = vector.load %arg5[%c3_53, %c0_54, %c0_55] : memref<4x8x128xf32, #tpu.memory_space<vmem>>, vector<1x8x128xf32>
      %79 = vector.shape_cast %78 : vector<1x8x128xf32> to vector<8x128xf32>
      %80 = vector.shape_cast %79 : vector<8x128xf32> to vector<1x8x128xf32>
      %cst_56 = arith.constant dense<0.000000e+00> : vector<1xf32>
      %81 = vector.multi_reduction <add>, %80, %cst_56 [1, 2] : vector<1x8x128xf32> to vector<1xf32>
      %82 = vector.shape_cast %81 : vector<1xf32> to vector<1x1x1xf32>
      %83 = vector.extract %82[0, 0, 0] : f32 from vector<1x1x1xf32>
      %c0_57 = arith.constant 0 : index
      %c3_58 = arith.constant 3 : index
      %84 = memref.load %arg4[%c0_57, %c3_58] : memref<1x4xf32, #tpu.memory_space<smem>>
      memref.store %83, %arg4[%c0_57, %c3_58] : memref<1x4xf32, #tpu.memory_space<smem>>
    } else {
    }
    return
  }
  func.func @transform_0(%arg0: i32, %arg1: i32) -> (i32, i32) {
    %c1_i32 = arith.constant 1 : i32
    %0 = arith.muli %arg0, %c1_i32 : i32
    %1 = arith.addi %0, %arg1 : i32
    %c0_i32 = arith.constant 0 : i32
    %2 = arith.minsi %1, %c0_i32 : i32
    %c0_i32_0 = arith.constant 0 : i32
    %c0_i32_1 = arith.constant 0 : i32
    return %2, %c0_i32_0 : i32, i32
  }
  func.func @transform_1(%arg0: i32, %arg1: i32) -> (i32, i32) {
    %c1_i32 = arith.constant 1 : i32
    %0 = arith.muli %arg0, %c1_i32 : i32
    %1 = arith.addi %0, %arg1 : i32
    %c0_i32 = arith.constant 0 : i32
    %2 = arith.minsi %1, %c0_i32 : i32
    %c0_i32_0 = arith.constant 0 : i32
    %c0_i32_1 = arith.constant 0 : i32
    return %2, %c0_i32_0 : i32, i32
  }
  func.func @transform_2(%arg0: i32, %arg1: i32) -> (i32, i32) {
    %c0_i32 = arith.constant 0 : i32
    %c0_i32_0 = arith.constant 0 : i32
    return %arg0, %c0_i32 : i32, i32
  }
}

</mosaic_0001>

<bundles_post_ra>
// kernel: tpu_custom_call.1
= control target key start
LH: loop header
LB: loop body
LE: loop exit
PB: predicated region body
PF: predicated region fallthrough
CT: control target
= control target key end

     0   :  { %7 = vsyncpa [#allocation4], 0  ;;  %s326_s0 = inlined_call_operand.hbm [shape: f32[16,128], index: 0, kind: input, shape index: {}]   ;;  %s327_s1 = inlined_call_operand.hbm [shape: f32[16,128], index: 1, kind: input, shape index: {}]   ;;  %s328_s2 = inlined_call_operand.hbm [shape: f32[1,4], index: 2, kind: output, shape index: {}]  }
   0x1   :  { %8 = vsyncpa [#allocation7], 0 }
   0x2   :  { %9 = vsyncpa [#allocation5], 0  ;;  %s270_s9 = smov [#allocation3]   ;;  %s210_s13 = scalar_lea.hbm %s326_s0, 256 }
   0x3   :  { %s21_s10 = sshll.u32 %s270_s9, 4  ;;  %p211_p0 = scmp.ne.s32.totalorder %s326_s0, %s210_s13  ;;  %s22_s10 = int_to_ptr.vmem [resolvable:$true] %s21_s10 }
   0x4   :  { %p214_p1 = scmp.lt.u32.totalorder %s210_s13, %s326_s0 }
   0x6   :  { %p216_p2 = pnand %p214_p1, %p211_p0 }
   0x8   :  { %219 = shalt.err (!%p216_p2)
}
   0x9   :  { %s220_s18 = scalar_lea.vmem %s22_s10, 256  ;;  %p225_p4 = scmp.lt.s32.totalorder %s22_s10, %s22_s10 }
   0xa   :  { %p221_p3 = scmp.ne.s32.totalorder %s22_s10, %s220_s18  ;;  %p226_p5 = scmp.lt.s32.totalorder %s220_s18, %s220_s18 }
   0xc   :  { %p227_p6 = por %p226_p5, %p225_p4 }
   0xe   :  { %p228_p7 = pnand %p227_p6, %p221_p3 }
  0x10   :  { %231 = shalt.err (!%p228_p7)
}
  0x11   :  { %s271_s19 = smov 128   ;;  %s272_s20 = smov 8  }
  0x12   :  { %27 = dma.hbm_to_vmem [thread:$0]  %s326_s0, 256, %s22_s10, [#allocation4], %s271_s19, %s271_s19, %s272_s20  }
  0x13   :  { %s273_s23 = smov [#allocation6]   ;;  %s232_s27 = scalar_lea.hbm %s327_s1, 256 }
  0x14   :  { %s39_s24 = sshll.u32 %s273_s23, 4  ;;  %p233_p8 = scmp.ne.s32.totalorder %s327_s1, %s232_s27  ;;  %s40_s24 = int_to_ptr.vmem [resolvable:$true] %s39_s24 }
  0x15   :  { %p236_p9 = scmp.lt.u32.totalorder %s232_s27, %s327_s1 }
  0x17   :  { %p238_p10 = pnand %p236_p9, %p233_p8 }
  0x19   :  { %241 = shalt.err (!%p238_p10)
}
  0x1a   :  { %s242_s4 = scalar_lea.vmem %s40_s24, 256  ;;  %p247_p12 = scmp.lt.s32.totalorder %s40_s24, %s40_s24 }
  0x1b   :  { %p243_p11 = scmp.ne.s32.totalorder %s40_s24, %s242_s4  ;;  %p248_p13 = scmp.lt.s32.totalorder %s242_s4, %s242_s4 }
  0x1d   :  { %p249_p0 = por %p248_p13, %p247_p12 }
  0x1f   :  { %p250_p1 = pnand %p249_p0, %p243_p11 }
  0x21   :  { %253 = shalt.err (!%p250_p1)
}
  0x22   :  { %45 = dma.hbm_to_vmem [thread:$0]  %s327_s1, 256, %s40_s24, [#allocation7], %s271_s19, %s271_s19, %s272_s20  }
  0x23   :  { %264 = dma.done.wait [#allocation4], 256  }
  0x24   :  { %265 = vsyncadd [#allocation4], 4294967040 }
  0x25   :  { %266 = dma.done.wait [#allocation7], 256  }
  0x26   :  { %267 = vsyncadd [#allocation7], 4294967040  ;;  %v70_v0 = vld [vmem:[#allocation6] sm:$0xff]  ;;  %v71_v1 = vld [vmem:[#allocation6 + $0x8] sm:$0xff]  ;;  %s254_s11 = scalar_lea.hbm %s328_s2, 16 }
  0x27   :  { %v68_v2 = vld [vmem:[#allocation3] sm:$0xff]  ;;  %v109_v3 = vadd.f32 %v71_v1, %v70_v0  ;;  %v69_v4 = vld [vmem:[#allocation3 + $0x8] sm:$0xff]  ;;  %v72_v20 = vmul.f32 4.0, %v70_v0  ;;  %v73_v22 = vmul.f32 4.0, %v71_v1  ;;  %p255_p2 = scmp.ne.s32.totalorder %s328_s2, %s254_s11  ;;  %p258_p3 = scmp.lt.u32.totalorder %s254_s11, %s328_s2 }
  0x28   :  { %v114_v5 = vmul.f32 %v70_v0, %v68_v2  ;;  %202 = vlog2.f32 %v68_v2  ;;  %v115_v6 = vmul.f32 %v71_v1, %v69_v4  ;;  %v82_v7 = vsub.f32 1.0, %v68_v2 }
  0x29   :  { %204 = vlog2.f32 %v69_v4  ;;  %147 = vadd.xlane.f32.xlu1 %v109_v3  ;;  %v83_v8 = vsub.f32 1.0, %v69_v4  ;;  %v74_v26 = vadd.f32 1.0, %v72_v20  ;;  %v75_v28 = vadd.f32 1.0, %v73_v22  ;;  %p260_p4 = pnand %p258_p3, %p255_p2 }
  0x2a   :  { %v116_v9 = vadd.f32 %v115_v6, %v114_v5  ;;  %206 = vlog2.f32 %v82_v7  ;;  %v104_v35 = vadd.f32 %v69_v4, %v68_v2 }
  0x2b   :  { %208 = vlog2.f32 %v83_v8 }
  0x2d   :  { %159 = vadd.xlane.f32.xlu1 %v116_v9 }
  0x32   :  { %v203_v10 = vpop.eup %202 }
  0x33   :  { %v205_v11 = vpop.eup %204  ;;  %v77_v12 = vmul.f32 0.6931472, %v203_v10 }
  0x34   :  { %v79_v13 = vmul.f32 0.6931472, %v205_v11  ;;  %v207_v14 = vpop.eup %206 }
  0x35   :  { %v209_v15 = vpop.eup %208  ;;  %v80_v16 = vmax.f32 %v77_v12, -100.0  ;;  %v85_v17 = vmul.f32 0.6931472, %v207_v14 }
  0x36   :  { %v81_v18 = vmax.f32 %v79_v13, -100.0  ;;  %v87_v19 = vmul.f32 0.6931472, %v209_v15 }
  0x37   :  { %v88_v21 = vmax.f32 %v85_v17, -100.0 }
  0x38   :  { %v89_v23 = vmax.f32 %v87_v19, -100.0 }
  0x39   :  { %v90_v24 = vsub.f32 %v80_v16, %v88_v21 }
  0x3a   :  { %v91_v25 = vsub.f32 %v81_v18, %v89_v23 }
  0x3b   :  { %v92_v27 = vmul.f32 %v90_v24, %v70_v0 }
  0x3c   :  { %v93_v29 = vmul.f32 %v91_v25, %v71_v1 }
  0x3d   :  { %v94_v30 = vadd.f32 %v92_v27, %v88_v21 }
  0x3e   :  { %v95_v31 = vadd.f32 %v93_v29, %v89_v23 }
  0x3f   :  { %v97_v32 = vmul.f32 %v94_v30, %v74_v26 }
  0x40   :  { %v98_v33 = vmul.f32 %v95_v31, %v75_v28 }
  0x42   :  { %v99_v34 = vadd.f32 %v98_v33, %v97_v32 }
  0x44   :  { %123 = vadd.xlane.f32.xlu0 %v99_v34 }
  0x48   :  { %135 = vadd.xlane.f32.xlu0 %v104_v35 }
  0xb6   :  { %v148_v36 = vpop.xlane.xlu1 %147 }
  0xb7   :  { %v149_v38 = vrot.slane %v148_v36, 4 }
  0xb9   :  { %v150_v40 = vadd.f32 %v149_v38, %v148_v36 }
  0xba   :  { %v160_v37 = vpop.xlane.xlu1 %159 }
  0xbb   :  { %v161_v39 = vrot.slane %v160_v37, 4  ;;  %v151_v45 = vrot.slane %v150_v40, 2 }
  0xbd   :  { %v162_v42 = vadd.f32 %v161_v39, %v160_v37  ;;  %v152_v52 = vadd.f32 %v151_v45, %v150_v40 }
  0xbf   :  { %v163_v47 = vrot.slane %v162_v42, 2  ;;  %v153_v58 = vrot.slane %v152_v52, 1 }
  0xc1   :  { %v164_v53 = vadd.f32 %v163_v47, %v162_v42  ;;  %v154_v62 = vadd.f32 %v153_v58, %v152_v52 }
  0xc3   :  { %v165_v60 = vrot.slane %v164_v53, 1 }
  0xc5   :  { %v166_v63 = vadd.f32 %v165_v60, %v164_v53 }
  0xd1   :  { %v124_v41 = vpop.xlane.xlu0 %123 }
  0xd2   :  { %v125_v43 = vrot.slane %v124_v41, 4 }
  0xd4   :  { %v126_v44 = vadd.f32 %v125_v43, %v124_v41 }
  0xd5   :  { %v136_v46 = vpop.xlane.xlu0 %135 }
  0xd6   :  { %v127_v48 = vrot.slane %v126_v44, 2  ;;  %v137_v49 = vrot.slane %v136_v46, 4 }
  0xd8   :  { %v138_v50 = vadd.f32 %v137_v49, %v136_v46  ;;  %v128_v51 = vadd.f32 %v127_v48, %v126_v44 }
  0xda   :  { %v139_v54 = vrot.slane %v138_v50, 2  ;;  %v129_v55 = vrot.slane %v128_v51, 1 }
  0xdc   :  { %v140_v56 = vadd.f32 %v139_v54, %v138_v50  ;;  %v130_v57 = vadd.f32 %v129_v55, %v128_v51 }
  0xde   :  { %189 = vpush %v130_v57  ;;  %v141_v59 = vrot.slane %v140_v56, 1 }
  0xe0   :  { %v142_v61 = vadd.f32 %v141_v59, %v140_v56 }
  0xe2   :  { %191 = vpush %v142_v61 }
  0xe3   :  { %193 = vpush %v154_v62 }
  0xe4   :  { %195 = vpush %v166_v63 }
 0x10f   :  { %s190_s1 = spop %189 }
 0x110   :  { %133 = sst [smem:[#allocation8]] %s190_s1 }
 0x113   :  { %s192_s6 = spop %191 }
 0x114   :  { %145 = sst [smem:[#allocation8 + $0x1]] %s192_s6  ;;  %s194_s7 = spop %193 }
 0x115   :  { %157 = sst [smem:[#allocation8 + $0x2]] %s194_s7  ;;  %s196_s8 = spop %195 }
 0x116   :  { %169 = sst [smem:[#allocation8 + $0x3]] %s196_s8 }
 0x117   :  { %263 = shalt.err (!%p260_p4)
}
 0x118   :  { %s274_s16 = smov [#allocation8]  }
 0x119   :  { %177 = dma.smem_to_hbm %s274_s16, 16, %s328_s2, [#allocation5]  }
 0x11a   :  { %268 = dma.done.wait [#allocation5], 16  }
 0x11b   :  { %269 = vsyncadd [#allocation5], 4294967280 }
 0x11c   :  { %181 = sfence }
 0x11d   :  { %182 = vsyncpa [#allocation4], 1 }
 0x11e   :  { %183 = vsyncpa [#allocation7], 1 }
 0x11f   :  { %184 = vsyncpa [#allocation5], 1 }

</bundles_post_ra>
